<compile_context>
chip_gen: v6e
topology: v6e:2x2x1
jax: 0.10.0
libtpu: 0.0.40
codegen_flags: <defaults>
</compile_context>

<pallas_src>
import jax
import jax.numpy as jnp
from jax.experimental import pallas as pl
from jax.experimental.pallas import tpu as pltpu


def _dma_copy_kernel(x_ref, o_ref, sem):
    # The only hardware work a view can ever require is materializing the
    # output buffer: a single HBM -> HBM async copy, then wait.
    cp = pltpu.make_async_copy(x_ref, o_ref, sem)
    cp.start()
    cp.wait()


def _resolve_shape(total, shape):
    """PyTorch-style view shape resolution (supports a single -1)."""
    shape = list(shape)
    if shape.count(-1) > 1:
        raise ValueError("only one -1 allowed in view shape")
    if -1 in shape:
        known = 1
        for s in shape:
            if s != -1:
                known *= s
        if known == 0 or total % known != 0:
            raise ValueError(f"cannot view {total} elements as {shape}")
        shape[shape.index(-1)] = total // known
    prod = 1
    for s in shape:
        prod *= s
    if prod != total:
        raise ValueError(f"view shape {shape} incompatible with {total} elements")
    return tuple(shape)


def pallas_view(x, shape):
    """Equivalent of `input.view(*shape)` with the data path run in Pallas."""
    total = x.size
    out_shape = _resolve_shape(total, shape)
    if total == 0:
        return x.reshape(out_shape)  # nothing to copy

    # Flatten (metadata-only) to a simple slab for the DMA.  Lane-aligned 2-D
    # in the common case; plain 1-D otherwise.  HBM->HBM DMA has no (8,128)
    # tiling or VMEM-size constraint, so any total size is handled uniformly
    # (no degenerate single-huge-block fallback anymore).
    LANE = 128
    if total % LANE == 0:
        flat_shape = (total // LANE, LANE)
    else:
        flat_shape = (total,)
    flat = x.reshape(flat_shape)

    nbytes = total * jnp.dtype(x.dtype).itemsize
    out = pl.pallas_call(
        _dma_copy_kernel,
        out_shape=jax.ShapeDtypeStruct(flat_shape, x.dtype),
        in_specs=[pl.BlockSpec(memory_space=pl.ANY)],   # stay in HBM, no auto-DMA
        out_specs=pl.BlockSpec(memory_space=pl.ANY),    # write directly to HBM
        scratch_shapes=[pltpu.SemaphoreType.DMA(())],
        cost_estimate=pl.CostEstimate(
            flops=0, transcendentals=0, bytes_accessed=2 * nbytes),
    )(flat)

    # The view itself: pure metadata reshape (no data movement).
    return out.reshape(out_shape)


class View:
    """JAX/Pallas analogue of the PyTorch View module (no parameters)."""

    def __init__(self, shape):
        self.shape = tuple(shape)

    def __call__(self, x):
        return pallas_view(x, self.shape)


if __name__ == "__main__":
    key = jax.random.PRNGKey(0)
    x = jax.random.normal(key, (2, 4, 16, 16), dtype=jnp.float32)

    # View (2, 4, 16, 16) -> (2, -1) == (2, 1024), like nn.View((2, -1)).
    mod = View((2, -1))
    y = jax.block_until_ready(mod(x))

    # Correctness check against plain reshape semantics.
    ref = x.reshape(2, -1)
    assert y.shape == (2, 1024), y.shape
    assert y.dtype == x.dtype
    assert bool(jnp.all(y == ref)), "mismatch vs reference reshape"

    print("KERNEL_OK")
</pallas_src>

<mosaic_0001>
module attributes {stable_mosaic.version = 11 : i64} {
  func.func @_dma_copy_kernel(%arg0: memref<16x128xf32, #tpu.memory_space<any>>, %arg1: memref<16x128xf32, #tpu.memory_space<any>>, %arg2: memref<!tpu.dma_semaphore, #tpu.memory_space<semaphore_mem>>) attributes {dimension_semantics = [], scalar_prefetch = 0 : i64, scratch_operands = 1 : i64, tpu.core_type = #tpu.core_type<tc>} {
    tpu.enqueue_dma source(%arg0 : memref<16x128xf32, #tpu.memory_space<any>>) target(%arg1 : memref<16x128xf32, #tpu.memory_space<any>>) target_semaphore(%arg2 : memref<!tpu.dma_semaphore, #tpu.memory_space<semaphore_mem>>)
    tpu.wait_dma2 semaphore(%arg2 : memref<!tpu.dma_semaphore, #tpu.memory_space<semaphore_mem>>) src(%arg0 : memref<16x128xf32, #tpu.memory_space<any>>) dst(%arg1 : memref<16x128xf32, #tpu.memory_space<any>>)
    return
  }
}

</mosaic_0001>

<bundles_post_ra>
// kernel: tpu_custom_call.1
= control target key start
LH: loop header
LB: loop body
LE: loop exit
PB: predicated region body
PF: predicated region fallthrough
CT: control target
= control target key end

     0   :  { %s28_s6 = smov [#allocation2]   ;;  %s29_s7 = smov 131072   ;;  %s47_s0 = inlined_call_operand.hbm [shape: f32[16,128], index: 0, kind: input, shape index: {}]   ;;  %s48_s1 = inlined_call_operand.hbm [shape: f32[16,128], index: 1, kind: output, shape index: {}]  }
   0x1   :  { %s30_s8 = smov 0  }
   0x2   :  { %12 = dma.general %s47_s0, 256, %s48_s1, %s28_s6, %s29_s7, [#allocation4], %s30_s8, 0  }
   0x3   :  { %26 = dma.done.wait [#allocation2], 256 }
   0x4   :  { %27 = vsyncadd [#allocation2], 4294967040 }
   0x5   :  { %16 = vsyncmov [#allocation2] }
   0x8   :  { %s17_s13 = vpop.sfrf %16 }
   0x9   :  { %p22_p0 = scmp.ne.s32.totalorder %s17_s13, 0 }
   0xb   :  { %21 = shalt.err (%p22_p0)  }

</bundles_post_ra>
